<compile_context>
chip_gen: v6e
topology: v6e:2x2x1
jax: 0.10.0
libtpu: 0.0.40
codegen_flags: <defaults>
</compile_context>

<pallas_src>
import jax
import jax.numpy as jnp
from jax.experimental import pallas as pl
from jax.experimental.pallas import tpu as pltpu


def _identity_copy_kernel(x_hbm, o_hbm, sem):
    # Single whole-array HBM -> HBM DMA: no VMEM staging, no vector
    # load/store slot pressure; runs at DMA / HBM bandwidth.
    cp = pltpu.make_async_copy(x_hbm, o_hbm, sem)
    cp.start()
    cp.wait()


def identity_backbone(x, *, materialize_copy: bool = False):
    """Forward pass of the Indentity backbone.

    Args:
        x: jnp.ndarray of shape (num_batches, num_clips, hdim).
        materialize_copy: if True, return a bit-exact copy produced by a
            Pallas HBM->HBM DMA kernel instead of the input array itself.

    Returns:
        jnp.ndarray identical to x (same shape, dtype, values).
    """
    if not materialize_copy:
        # Optimal: identity is a no-op — eliminate 2x tensor-size HBM traffic
        # and the kernel dispatch entirely.
        return x

    return pl.pallas_call(
        _identity_copy_kernel,
        out_shape=jax.ShapeDtypeStruct(x.shape, x.dtype),
        # Leave both operands in HBM; the kernel drives the DMA itself.
        in_specs=[pl.BlockSpec(memory_space=pl.ANY)],
        out_specs=pl.BlockSpec(memory_space=pl.ANY),
        scratch_shapes=[pltpu.SemaphoreType.DMA],
        # Accurate pure-bandwidth cost so XLA can overlap this custom call
        # with surrounding compute.
        cost_estimate=pl.CostEstimate(
            flops=0,
            transcendentals=0,
            bytes_accessed=2 * x.size * x.dtype.itemsize,
        ),
    )(x)


if __name__ == "__main__":
    key = jax.random.PRNGKey(0)
    # (num_batches, num_clips, hdim) as implied by the module docstring.
    x = jax.random.normal(key, (2, 8, 32), dtype=jnp.float32)

    # Default (optimal) path: pure pass-through, no kernel launch.
    y = identity_backbone(x)
    jax.block_until_ready(y)
    assert y.shape == x.shape, (y.shape, x.shape)
    assert y.dtype == x.dtype, (y.dtype, x.dtype)
    assert bool(jnp.array_equal(y, x)), "identity output mismatch (pass-through)"

    # Materialized-copy path: exercises the Pallas HBM->HBM DMA kernel on TPU.
    y_copy = identity_backbone(x, materialize_copy=True)
    jax.block_until_ready(y_copy)
    assert y_copy.shape == x.shape, (y_copy.shape, x.shape)
    assert y_copy.dtype == x.dtype, (y_copy.dtype, x.dtype)
    assert bool(jnp.array_equal(y_copy, x)), "identity output mismatch (DMA copy)"

    print("KERNEL_OK")
</pallas_src>

<mosaic_0001>
module attributes {stable_mosaic.version = 11 : i64} {
  func.func @_identity_copy_kernel(%arg0: memref<2x8x32xf32, #tpu.memory_space<any>>, %arg1: memref<2x8x32xf32, #tpu.memory_space<any>>, %arg2: memref<!tpu.dma_semaphore, #tpu.memory_space<semaphore_mem>>) attributes {dimension_semantics = [], scalar_prefetch = 0 : i64, scratch_operands = 1 : i64, tpu.core_type = #tpu.core_type<tc>} {
    tpu.enqueue_dma source(%arg0 : memref<2x8x32xf32, #tpu.memory_space<any>>) target(%arg1 : memref<2x8x32xf32, #tpu.memory_space<any>>) target_semaphore(%arg2 : memref<!tpu.dma_semaphore, #tpu.memory_space<semaphore_mem>>)
    tpu.wait_dma2 semaphore(%arg2 : memref<!tpu.dma_semaphore, #tpu.memory_space<semaphore_mem>>) src(%arg0 : memref<2x8x32xf32, #tpu.memory_space<any>>) dst(%arg1 : memref<2x8x32xf32, #tpu.memory_space<any>>)
    return
  }
}

</mosaic_0001>

<bundles_post_ra>
// kernel: tpu_custom_call.1
= control target key start
LH: loop header
LB: loop body
LE: loop exit
PB: predicated region body
PF: predicated region fallthrough
CT: control target
= control target key end

     0   :  { %s29_s6 = smov [#allocation2]   ;;  %s30_s7 = smov 131072   ;;  %s48_s0 = inlined_call_operand.hbm [shape: f32[2,8,32], index: 0, kind: input, shape index: {}]   ;;  %s49_s1 = inlined_call_operand.hbm [shape: f32[2,8,32], index: 1, kind: output, shape index: {}]  }
   0x1   :  { %s31_s8 = smov 0  }
   0x2   :  { %12 = dma.general %s48_s0, 256, %s49_s1, %s29_s6, %s30_s7, [#allocation4], %s31_s8, 0  }
   0x3   :  { %27 = dma.done.wait [#allocation2], 256 }
   0x4   :  { %28 = vsyncadd [#allocation2], 4294967040 }
   0x5   :  { %17 = vsyncmov [#allocation2] }
   0x8   :  { %s18_s13 = vpop.sfrf %17 }
   0x9   :  { %p23_p0 = scmp.ne.s32.totalorder %s18_s13, 0 }
   0xb   :  { %22 = shalt.err (%p23_p0)  }

</bundles_post_ra>
